<compile_context>
chip_gen: v7x
topology: tpu7x:2x2x1
jax: 0.10.0
libtpu: 0.0.40
codegen_flags: <defaults>
</compile_context>

<pallas_src>
import jax
import jax.numpy as jnp
from jax import lax
from jax.experimental import pallas as pl
from jax.experimental.pallas import tpu as pltpu


def _round_up(n, m):
    return ((n + m - 1) // m) * m


def mlp_kernel(x_ref, w1_ref, b1_ref, w2_ref, b2_ref, w3_ref, b3_ref, o_ref):
    x = x_ref[...]                                                # (TB, in_dim) f32

    # fc_1 + ReLU  (bf16 into the MXU, f32 accumulate; elementwise stays f32)
    h1 = jnp.dot(x.astype(jnp.bfloat16), w1_ref[...],
                 preferred_element_type=jnp.float32) + b1_ref[...]
    h1 = jnp.maximum(h1, 0.0)
    # dropout(p=0.5) -> identity in eval mode

    # fc_2 + ReLU
    h2 = jnp.dot(h1.astype(jnp.bfloat16), w2_ref[...],
                 preferred_element_type=jnp.float32) + b2_ref[...]
    h2 = jnp.maximum(h2, 0.0)
    # dropout(p=0.5) -> identity in eval mode

    # fc_3: contract the hidden axis so the batch dim lands on lanes -> (1, TB)
    out = lax.dot_general(
        w3_ref[...], h2.astype(jnp.bfloat16),
        dimension_numbers=(((1,), (1,)), ((), ())),
        preferred_element_type=jnp.float32) + b3_ref[...]
    o_ref[...] = out[None].astype(o_ref.dtype)                    # (1, 1, TB)


def mlp_forward(x, params, *, block_batch=2048):
    """x: (B, in_dim) float32.  Returns (B,) float32 logits."""
    B, in_dim = x.shape
    w1, b1 = params["w1"], params["b1"]
    w2, b2 = params["w2"], params["b2"]
    w3, b3 = params["w3"], params["b3"]

    h1_dim, h2_dim = w1.shape[1], w2.shape[1]
    # fc_3 is Linear(hidden_dim_1, 1) in the reference but consumes h2 -> only
    # valid when hidden_dim_1 == hidden_dim_2.
    assert h1_dim == h2_dim and w3.shape == (1, h1_dim), "need hidden_dim_1 == hidden_dim_2"

    # Batch tile: big enough to amortize per-step overhead, small enough that the
    # double-buffered x tiles + activations stay far below v7x's 32 MiB scoped VMEM.
    if B <= block_batch:
        tb = _round_up(max(B, 8), 8)         # single tile (block == full array)
    else:
        tb = _round_up(block_batch, 128)     # multi-tile: sublane-aligned, lane-dense
    b_pad = _round_up(B, tb)
    grid = b_pad // tb
    if b_pad != B:
        x = jnp.pad(x, ((0, b_pad - B), (0, 0)))   # padded rows sliced off below

    rep = lambda i: (0, 0)                   # weights/biases: VMEM-resident (no re-DMA)
    out = pl.pallas_call(
        mlp_kernel,
        grid=(grid,),
        out_shape=jax.ShapeDtypeStruct((grid, 1, tb), jnp.float32),
        in_specs=[
            pl.BlockSpec((tb, in_dim), lambda i: (i, 0)),         # streamed x tiles
            pl.BlockSpec(w1.shape, rep),
            pl.BlockSpec(b1.shape, rep),
            pl.BlockSpec(w2.shape, rep),
            pl.BlockSpec(b2.shape, rep),
            pl.BlockSpec(w3.shape, rep),
            pl.BlockSpec(b3.shape, rep),
        ],
        out_specs=pl.BlockSpec((1, 1, tb), lambda i: (i, 0, 0)),  # lane-dense rows
        compiler_params=pltpu.CompilerParams(
            dimension_semantics=("parallel",),                    # v7x: 2 TCs share the grid
            vmem_limit_bytes=32 * 1024 * 1024,
        ),
    )(x, w1, b1, w2, b2, w3, b3)
    return out.reshape(b_pad)[:B]


def init_params(key, in_dim, hidden_dim_1, hidden_dim_2):
    """Deterministic init mirroring torch.nn.Linear shapes (weights -> bf16)."""
    assert hidden_dim_1 == hidden_dim_2, "reference fc_3 requires hidden_dim_1 == hidden_dim_2"
    ks = jax.random.split(key, 6)

    def linear(kw, kb, fan_in, fan_out):
        bound = 1.0 / float(fan_in) ** 0.5
        w = jax.random.uniform(kw, (fan_out, fan_in), jnp.float32, -bound, bound)
        b = jax.random.uniform(kb, (fan_out,), jnp.float32, -bound, bound)
        return w, b

    w1, b1 = linear(ks[0], ks[1], in_dim, hidden_dim_1)
    w2, b2 = linear(ks[2], ks[3], hidden_dim_1, hidden_dim_2)
    w3, b3 = linear(ks[4], ks[5], hidden_dim_1, 1)     # fc_3 = Linear(hidden_dim_1, 1)
    return {
        # pre-transposed to (fan_in, fan_out); bf16 MXU operands, f32 biases
        "w1": w1.T.astype(jnp.bfloat16), "b1": b1.reshape(1, -1),
        "w2": w2.T.astype(jnp.bfloat16), "b2": b2.reshape(1, -1),
        # fc_3 kept in torch layout (1, hidden_dim_1): the kernel contracts its
        # hidden axis directly against h2 so the batch dim lands on lanes.
        "w3": w3.astype(jnp.bfloat16),   "b3": b3.reshape(1, 1),
    }


def mlp_reference(x, params):
    """Pure-JAX reference with the same bf16-operand / f32-accumulate math."""
    w1, b1 = params["w1"], params["b1"]
    w2, b2 = params["w2"], params["b2"]
    w3, b3 = params["w3"], params["b3"]
    h1 = jnp.maximum(jnp.dot(x.astype(jnp.bfloat16), w1,
                             preferred_element_type=jnp.float32) + b1, 0.0)
    h2 = jnp.maximum(jnp.dot(h1.astype(jnp.bfloat16), w2,
                             preferred_element_type=jnp.float32) + b2, 0.0)
    out = jnp.dot(h2.astype(jnp.bfloat16), w3.T,
                  preferred_element_type=jnp.float32) + b3
    return out[:, 0]


if __name__ == "__main__":
    # Small shapes consistent with the module: in_dim = 32, hidden_dim_1 = hidden_dim_2 = 32.
    IN_DIM, H1, H2 = 32, 32, 32
    key = jax.random.PRNGKey(0)
    kx, kp = jax.random.split(key)
    params = init_params(kp, IN_DIM, H1, H2)

    # Multi-tile path: B=300 with 128-row tiles -> grid=3, exercises batch padding.
    x_big = jax.random.normal(kx, (300, IN_DIM), dtype=jnp.float32)
    out_big = jax.block_until_ready(mlp_forward(x_big, params, block_batch=128))
    ref_big = mlp_reference(x_big, params)
    assert out_big.shape == (300,), out_big.shape
    assert jnp.allclose(out_big, ref_big, atol=1e-3, rtol=1e-3), "mismatch (multi-tile)"

    # Single-tile path: tiny batch, block == full array.
    x_small = x_big[:8]
    out_small = jax.block_until_ready(mlp_forward(x_small, params))
    assert out_small.shape == (8,), out_small.shape
    assert jnp.allclose(out_small, ref_big[:8], atol=1e-3, rtol=1e-3), "mismatch (single-tile)"

    print("KERNEL_OK")
</pallas_src>

<mosaic_0001>
module attributes {stable_mosaic.version = 11 : i64} {
  func.func @mlp_kernel(%arg0: i32, %arg1: memref<128x32xf32, #tpu.memory_space<vmem>>, %arg2: memref<32x32xbf16, #tpu.memory_space<vmem>>, %arg3: memref<1x32xf32, #tpu.memory_space<vmem>>, %arg4: memref<32x32xbf16, #tpu.memory_space<vmem>>, %arg5: memref<1x32xf32, #tpu.memory_space<vmem>>, %arg6: memref<1x32xbf16, #tpu.memory_space<vmem>>, %arg7: memref<1x1xf32, #tpu.memory_space<vmem>>, %arg8: memref<1x1x128xf32, #tpu.memory_space<vmem>>) attributes {dimension_semantics = [#tpu.dimension_semantics<parallel>], iteration_bounds = array<i64: 3>, scalar_prefetch = 0 : i64, scratch_operands = 0 : i64, tpu.core_type = #tpu.core_type<tc>, window_params = [{transform_indices = @transform_0, window_bounds = array<i64: 128, 32>}, {pipeline_mode = #tpu.pipeline_mode<synchronous>, transform_indices = @transform_1, window_bounds = array<i64: 32, 32>}, {pipeline_mode = #tpu.pipeline_mode<synchronous>, transform_indices = @transform_2, window_bounds = array<i64: 1, 32>}, {pipeline_mode = #tpu.pipeline_mode<synchronous>, transform_indices = @transform_3, window_bounds = array<i64: 32, 32>}, {pipeline_mode = #tpu.pipeline_mode<synchronous>, transform_indices = @transform_4, window_bounds = array<i64: 1, 32>}, {pipeline_mode = #tpu.pipeline_mode<synchronous>, transform_indices = @transform_5, window_bounds = array<i64: 1, 32>}, {pipeline_mode = #tpu.pipeline_mode<synchronous>, transform_indices = @transform_6, window_bounds = array<i64: 1, 1>}, {transform_indices = @transform_7, window_bounds = array<i64: 1, 1, 128>}]} {
    %c0 = arith.constant 0 : index
    %c0_0 = arith.constant 0 : index
    %0 = vector.load %arg1[%c0, %c0_0] : memref<128x32xf32, #tpu.memory_space<vmem>>, vector<128x32xf32>
    %1 = arith.truncf %0 : vector<128x32xf32> to vector<128x32xbf16>
    %c0_1 = arith.constant 0 : index
    %c0_2 = arith.constant 0 : index
    %2 = vector.load %arg2[%c0_1, %c0_2] : memref<32x32xbf16, #tpu.memory_space<vmem>>, vector<32x32xbf16>
    %cst = arith.constant dense<0.000000e+00> : vector<128x32xf32>
    %3 = tpu.matmul %1, %2, %cst {dimension_numbers = #tpu.dot_dimension_numbers<[1], [0], [0], [1], [0, 0, 1, 1], [], []>} : vector<128x32xbf16>, vector<32x32xbf16>, vector<128x32xf32> -> vector<128x32xf32>
    %c0_3 = arith.constant 0 : index
    %c0_4 = arith.constant 0 : index
    %4 = vector.load %arg3[%c0_3, %c0_4] : memref<1x32xf32, #tpu.memory_space<vmem>>, vector<1x32xf32>
    %5 = vector.broadcast %4 : vector<1x32xf32> to vector<128x32xf32>
    %6 = arith.addf %3, %5 : vector<128x32xf32>
    %cst_5 = arith.constant 0.000000e+00 : f32
    %7 = vector.broadcast %cst_5 : f32 to vector<128x32xf32>
    %8 = arith.maximumf %6, %7 : vector<128x32xf32>
    %9 = arith.truncf %8 : vector<128x32xf32> to vector<128x32xbf16>
    %c0_6 = arith.constant 0 : index
    %c0_7 = arith.constant 0 : index
    %10 = vector.load %arg4[%c0_6, %c0_7] : memref<32x32xbf16, #tpu.memory_space<vmem>>, vector<32x32xbf16>
    %cst_8 = arith.constant dense<0.000000e+00> : vector<128x32xf32>
    %11 = tpu.matmul %9, %10, %cst_8 {dimension_numbers = #tpu.dot_dimension_numbers<[1], [0], [0], [1], [0, 0, 1, 1], [], []>} : vector<128x32xbf16>, vector<32x32xbf16>, vector<128x32xf32> -> vector<128x32xf32>
    %c0_9 = arith.constant 0 : index
    %c0_10 = arith.constant 0 : index
    %12 = vector.load %arg5[%c0_9, %c0_10] : memref<1x32xf32, #tpu.memory_space<vmem>>, vector<1x32xf32>
    %13 = vector.broadcast %12 : vector<1x32xf32> to vector<128x32xf32>
    %14 = arith.addf %11, %13 : vector<128x32xf32>
    %cst_11 = arith.constant 0.000000e+00 : f32
    %15 = vector.broadcast %cst_11 : f32 to vector<128x32xf32>
    %16 = arith.maximumf %14, %15 : vector<128x32xf32>
    %c0_12 = arith.constant 0 : index
    %c0_13 = arith.constant 0 : index
    %17 = vector.load %arg6[%c0_12, %c0_13] : memref<1x32xbf16, #tpu.memory_space<vmem>>, vector<1x32xbf16>
    %18 = arith.truncf %16 : vector<128x32xf32> to vector<128x32xbf16>
    %cst_14 = arith.constant dense<0.000000e+00> : vector<1x128xf32>
    %19 = tpu.matmul %17, %18, %cst_14 {dimension_numbers = #tpu.dot_dimension_numbers<[1], [1], [0], [0], [0, 0, 1, 0], [], []>} : vector<1x32xbf16>, vector<128x32xbf16>, vector<1x128xf32> -> vector<1x128xf32>
    %c0_15 = arith.constant 0 : index
    %c0_16 = arith.constant 0 : index
    %20 = vector.load %arg7[%c0_15, %c0_16] : memref<1x1xf32, #tpu.memory_space<vmem>>, vector<1x1xf32>
    %21 = vector.broadcast %20 : vector<1x1xf32> to vector<1x128xf32>
    %22 = arith.addf %19, %21 : vector<1x128xf32>
    %23 = vector.shape_cast %22 : vector<1x128xf32> to vector<1x1x128xf32>
    %c0_17 = arith.constant 0 : index
    %c0_18 = arith.constant 0 : index
    %c0_19 = arith.constant 0 : index
    %24 = vector.load %arg8[%c0_17, %c0_18, %c0_19] : memref<1x1x128xf32, #tpu.memory_space<vmem>>, vector<1x1x128xf32>
    tpu.vector_store %arg8[%c0_17, %c0_18, %c0_19], %23 {strides = array<i32>} : memref<1x1x128xf32, #tpu.memory_space<vmem>>, vector<1x1x128xf32>,
    return
  }
  func.func @transform_0(%arg0: i32) -> (i32, i32) {
    %c0_i32 = arith.constant 0 : i32
    %c0_i32_0 = arith.constant 0 : i32
    return %arg0, %c0_i32 : i32, i32
  }
  func.func @transform_1(%arg0: i32) -> (i32, i32) {
    %c0_i32 = arith.constant 0 : i32
    %c0_i32_0 = arith.constant 0 : i32
    %c0_i32_1 = arith.constant 0 : i32
    return %c0_i32, %c0_i32_0 : i32, i32
  }
  func.func @transform_2(%arg0: i32) -> (i32, i32) {
    %c0_i32 = arith.constant 0 : i32
    %c0_i32_0 = arith.constant 0 : i32
    %c0_i32_1 = arith.constant 0 : i32
    return %c0_i32, %c0_i32_0 : i32, i32
  }
  func.func @transform_3(%arg0: i32) -> (i32, i32) {
    %c0_i32 = arith.constant 0 : i32
    %c0_i32_0 = arith.constant 0 : i32
    %c0_i32_1 = arith.constant 0 : i32
    return %c0_i32, %c0_i32_0 : i32, i32
  }
  func.func @transform_4(%arg0: i32) -> (i32, i32) {
    %c0_i32 = arith.constant 0 : i32
    %c0_i32_0 = arith.constant 0 : i32
    %c0_i32_1 = arith.constant 0 : i32
    return %c0_i32, %c0_i32_0 : i32, i32
  }
  func.func @transform_5(%arg0: i32) -> (i32, i32) {
    %c0_i32 = arith.constant 0 : i32
    %c0_i32_0 = arith.constant 0 : i32
    %c0_i32_1 = arith.constant 0 : i32
    return %c0_i32, %c0_i32_0 : i32, i32
  }
  func.func @transform_6(%arg0: i32) -> (i32, i32) {
    %c0_i32 = arith.constant 0 : i32
    %c0_i32_0 = arith.constant 0 : i32
    %c0_i32_1 = arith.constant 0 : i32
    return %c0_i32, %c0_i32_0 : i32, i32
  }
  func.func @transform_7(%arg0: i32) -> (i32, i32, i32) {
    %c0_i32 = arith.constant 0 : i32
    %c0_i32_0 = arith.constant 0 : i32
    %c0_i32_1 = arith.constant 0 : i32
    return %arg0, %c0_i32, %c0_i32_0 : i32, i32, i32
  }
}

</mosaic_0001>

<bundles_post_ra>
// kernel: tpu_custom_call.1
= control target key start
LH: loop header
LB: loop body
LE: loop exit
PB: predicated region body
PF: predicated region fallthrough
CT: control target
= control target key end

     0   :  { %s1240_s0 = inlined_call_operand.vmem [shape: f32[384,32], index: 0, kind: input, shape index: {}]   ;;  %s1241_s1 = inlined_call_operand.vmem [shape: bf16[32,32], index: 1, kind: input, shape index: {}]   ;;  %s1242_s2 = inlined_call_operand.vmem [shape: f32[1,32], index: 2, kind: input, shape index: {}]   ;;  %s1243_s3 = inlined_call_operand.vmem [shape: bf16[32,32], index: 3, kind: input, shape index: {}]   ;;  %s1244_s4 = inlined_call_operand.vmem [shape: f32[1,32], index: 4, kind: input, shape index: {}]   ;;  %s1245_s5 = inlined_call_operand.vmem [shape: bf16[1,32], index: 5, kind: input, shape index: {}]   ;;  %s1246_s6 = inlined_call_operand.<no memory space> [shape: f32[1,1], index: 6, kind: input, shape index: {}]   ;;  %s1247_s7 = inlined_call_operand.hbm [shape: f32[3,1,128], index: 7, kind: output, shape index: {}]  }
   0x1   :  { %v12_v0 = vstv %s1246_s6 }
   0x2   :  { %13 = vst [vmem:[#allocation2] sm:$0x1] %v12_v0 }
   0x3   :  { %14 = vsyncpa [#allocation4], 0 }
   0x4   :  { %16 = vsyncpa [#allocation4 + $0x1], 0  ;;  %s1068_s26 = smov 0   ;;  %s1070_s27 = smov 0  }
   0x5   :  { %s1072_s28 = smov 0   ;;  %s1074_s29 = smov 0  }
   0x6 LB: > { %s788_s6 = sadd.s32 4294967295, %s1019_s29   ;;  %s789_s30 = sadd.s32 4294967294, %s1019_s29   ;;  %s1019_s29 = sphi %s1074_s29, %s1253_s29   ;;  %s1015_s28 = sphi %s1072_s28, %s1252_s28   ;;  %s1011_s27 = sphi %s1070_s27, %s1251_s27   ;;  %s1007_s26 = sphi %s1068_s26, %s1250_s26  }
   0x7   : > { %s1091_s8 = sadd.s32 1, %s1019_s29   ;;  %s181_s9 = sadd.s32 1, %s1015_s28 }
   0x8   : > { %s178_s10 = ssub.s32 %s1019_s29, %s1091_s8  ;;  %p191_p0 = scmp.ne.s32.totalorder %s1015_s28, %s1011_s27 }
   0x9   : > { %p179_p1 = scmp.eq.s32.totalorder %s178_s10, 0  ;;  %p192_p2 = scmp.eq.s32.totalorder %s788_s6, 2 }
   0xa   : > { %p197_p3 = scmp.ne.s32.totalorder %s1011_s27, %s1007_s26  ;;  %p198_p4 = scmp.eq.s32.totalorder %s789_s30, 2 }
   0xb   : > { %s1101_s11 = scalar_select %p179_p1, %s1015_s28, %s181_s9  }
   0xc   : > { %p1103_p5 = por %p192_p2, %p191_p0  ;;  %p1107_p6 = por %p198_p4, %p197_p3 }
   0xd   : > { %p792_p7 = scmp.ge.s32.totalorder %s1019_s29, 1  ;;  %p243_p8 = scmp.lt.s32.totalorder %s1019_s29, 4 }
   0xf   : > { %p244_p9 = pnand %p792_p7, %p243_p8 }
  0x10   : > { %v953_v1 = vld [vmem:[%s1241_s1] sm:$0xff] (!%p244_p9)   ;;  %s1116_s16 = sshll.u32 (!%p244_p9), %s788_s6, 4  ;;  %v954_v2 = vld [vmem:[%s1241_s1 + $0x8] sm:$0xff] (!%p244_p9)   ;;  %vm328_vm0 = vcmask (!%p244_p9), 261120   ;;  %vm1022_vm1 = vmmov (!%p244_p9), 0   ;;  %s1024_s30 = smov (!%p244_p9), [#allocation3]  }
  0x11   : > { %247 = sbr.rel (%p244_p9) target bundleno = 767 (0x2ff), region = 48  ;;  %p275_p10 = scmp.lt.s32.totalorder (!%p244_p9), %s1116_s16, 47  ;;  %850 = vmatprep.subr.bf16.mxu1 (!%p244_p9), %v953_v1  ;;  %v955_v3 = vld [vmem:[%s1243_s3] sm:$0xff] (!%p244_p9)   ;;  %v956_v13 = vld [vmem:[%s1243_s3 + $0x8] sm:$0xff] (!%p244_p9)  }
  0x12   : > { %851 = vmatpush3.bf16.msra.mxu1 (!%p244_p9), %v953_v1  ;;  %v795_v29 = vld [vmem:[%s1242_s2] ss:$0 sm:$0xff] (!%p244_p9)  ;;  %s1198_s24 = scalar_lea.hbm (!%p244_p9), %s1247_s7, %s1116_s16  ;;  %s961_s9 = sshll.u32 (!%p244_p9), %s1024_s30, 4  ;;  %s962_s9 = int_to_ptr.vmem [resolvable:$false] %s961_s9 }
  0x13   : > { %852 = vmatprep.subr.bf16.mxu1 (!%p244_p9), %v954_v2  ;;  %s963_s10 = scalar_lea.vmem (!%p244_p9), %s962_s9, 32 }
  0x16   : > { %853 = vmatpush3.bf16.msra.mxu1 (!%p244_p9), %v954_v2 }
  0x17   : > { %870 = vmatprep.subr.bf16.mxu1 (!%p244_p9), %v955_v3 }
  0x18   : > { %s276_s19 = scalar_select %p275_p10, %s1116_s16, 47 }
  0x1a   : > { %s794_s22 = sshll.u32 %s276_s19, 3  ;;  %s272_s19 = sand.u32 1, %s1011_s27  }
  0x1b   : > { %s1129_s25 = scalar_lea.vmem %s1240_s0, %s794_s22  ;;  %s273_s20 = scalar_lea.vmem [#allocation3], %s272_s19 }
  0x1c   : > { %v281_v4 = vld [vmem:[%s1129_s25] sm:$0xff]  ;;  %v282_v5 = vld [vmem:[%s1129_s25 + $0x8] sm:$0xff]  ;;  %v283_v6 = vld [vmem:[%s1129_s25 + $0x10] sm:$0xff]  ;;  %s734_s21 = sshll.u32 %s273_s20, 4  ;;  %s1200_s21 = int_to_ptr.vmem [resolvable:$true] %s734_s21 }
  0x1d   : > { %v297_v7 = vpack.c.bf16 %v282_v5, %v281_v4  ;;  %v284_v8 = vld [vmem:[%s1129_s25 + $0x18] sm:$0xff]  ;;  %v285_v9 = vld [vmem:[%s1129_s25 + $0x20] sm:$0xff]  ;;  %v286_v10 = vld [vmem:[%s1129_s25 + $0x28] sm:$0xff]  ;;  %s957_s6 = scalar_lea.vmem %s1200_s21, 16  ;;  %p964_p0 = scmp.lt.s32.totalorder %s1200_s21, %s962_s9 }
  0x1e   : > { %v298_v11 = vpack.c.bf16 %v284_v8, %v283_v6  ;;  %v299_v12 = vpack.c.bf16 %v286_v10, %v285_v9  ;;  %v287_v14 = vld [vmem:[%s1129_s25 + $0x30] sm:$0xff]  ;;  %v288_v15 = vld [vmem:[%s1129_s25 + $0x38] sm:$0xff]  ;;  %v289_v16 = vld [vmem:[%s1129_s25 + $0x40] sm:$0xff]  ;;  %p958_p11 = scmp.ne.s32.totalorder %s1200_s21, %s957_s6  ;;  %p965_p1 = scmp.lt.s32.totalorder %s963_s10, %s957_s6 }
  0x1f   : > { %854 = vmatprep.mubr.msk.bf16.mxu1 %vm328_vm0, %v297_v7  ;;  %v290_v17 = vld [vmem:[%s1129_s25 + $0x48] sm:$0xff]  ;;  %v300_v18 = vpack.c.bf16 %v288_v15, %v287_v14  ;;  %v291_v20 = vld [vmem:[%s1129_s25 + $0x50] sm:$0xff]  ;;  %v292_v21 = vld [vmem:[%s1129_s25 + $0x58] sm:$0xff] }
  0x20   : > { %855 = vmatmul.mubr.msk.bf16.vlgmr.msra.gmra.mrb[0].mxu1 %vm328_vm0, %v298_v11  ;;  %v301_v19 = vpack.c.bf16 %v290_v17, %v289_v16  ;;  %v293_v22 = vld [vmem:[%s1129_s25 + $0x60] sm:$0xff]  ;;  %v294_v23 = vld [vmem:[%s1129_s25 + $0x68] sm:$0xff]  ;;  %v302_v24 = vpack.c.bf16 %v292_v21, %v291_v20  ;;  %v295_v26 = vld [vmem:[%s1129_s25 + $0x70] sm:$0xff]  ;;  %p959_p12 = pnand %p958_p11, %p1103_p5  ;;  %p966_p2 = por %p965_p1, %p964_p0 }
  0x21   : > { %858 = vmatprep.mubr.msk.bf16.mxu1 %vm328_vm0, %v299_v12  ;;  %871 = vmatpush3.bf16.msra.mxu1 %v955_v3  ;;  %v303_v25 = vpack.c.bf16 %v294_v23, %v293_v22  ;;  %v296_v27 = vld [vmem:[%s1129_s25 + $0x78] sm:$0xff]  ;;  %v1021_v22 = vmov 0.0   ;;  %v643_v23 = vld [vmem:[#allocation2] sm:$0x1]  ;;  %s722_s25 = scalar_lea.sflag [#allocation4], %s272_s19 }
  0x22   : > { %872 = vmatprep.subr.bf16.mxu1 %v956_v13  ;;  %v304_v28 = vpack.c.bf16 %v296_v27, %v295_v26  ;;  %890 = vmatprep.subr.bf16.mxu0 %v1021_v22  ;;  %p960_p13 = pneg %p959_p12 }
  0x23   : > { %906 = vmatprep.mubr.msk.bf16.mxu0 %vm1022_vm1, %v1021_v22 }
  0x24   : > { %p967_p3 = pnand %p966_p2, %p960_p13 }
  0x25   : > { %873 = vmatpush3.bf16.msra.mxu1 %v956_v13 }
  0x28   : > { %859 = vmatmul.mubr.msk.bf16.gmra.mrb[4].mxu1 %vm328_vm0, %v300_v18 }
  0x29   : > { %862 = vmatprep.mubr.msk.bf16.mxu1 %vm328_vm0, %v301_v19 }
  0x30   : > { %863 = vmatmul.mubr.msk.bf16.gmra.mrb[8].mxu1 %vm328_vm0, %v302_v24  ;;  %v1023_v24 = vmov 0  }
  0x31   : > { %866 = vmatprep.mubr.msk.bf16.mxu1 %vm328_vm0, %v303_v25  ;;  %952 = vset.pattern.permute.xlu0 %v1023_v24  ;;  %v806_v25 = vld [vmem:[%s1244_s4] ss:$0 sm:$0xff] }
  0x32   : > { %646 = vperm.xlu0 %952, %v643_v23  }
  0x38   : > { %867 = vmatmul.mubr.msk.bf16.gmra.mrb[12].mxu1 %vm328_vm0, %v304_v28 }
  0xf3   : > { %v856_v30 = vpop.f32.mrb[0].mxu1 }
  0xf4   : > { %v396_v31 = vadd.f32 %v856_v30, %v795_v29  ;;  %v387_v32 = vpop.f32.mrb[1].mxu1 }
  0xf5   : > { %v388_v33 = vadd.f32 %v795_v29, %v387_v32  ;;  %v857_v34 = vpop.f32.mrb[2].mxu1 }
  0xf6   : > { %v399_v35 = vadd.f32 %v857_v34, %v795_v29  ;;  %v390_v36 = vpop.f32.mrb[3].mxu1  ;;  %v452_v38 = vmax.f32 %v396_v31, 0.0 }
  0xf7   : > { %v391_v37 = vadd.f32 %v795_v29, %v390_v36  ;;  %v450_v40 = vmax.f32 %v388_v33, 0.0 }
  0xf8   : > { %v453_v39 = vmax.f32 %v399_v35, 0.0 }
  0xf9   : > { %v451_v41 = vmax.f32 %v391_v37, 0.0 }
  0xfa   : > { %v467_v42 = vpack.c.bf16 %v453_v39, %v452_v38 }
  0xfb   : > { %v466_v43 = vpack.c.bf16 %v451_v41, %v450_v40  ;;  %v860_v44 = vpop.f32.mrb[4].mxu1 }
  0xfc   : > { %v412_v45 = vadd.f32 %v860_v44, %v795_v29  ;;  %v403_v46 = vpop.f32.mrb[5].mxu1 }
  0xfd   : > { %v404_v47 = vadd.f32 %v795_v29, %v403_v46  ;;  %874 = vmatprep.mubr.msk.bf16.mxu1 %vm328_vm0, %v466_v43  ;;  %v861_v48 = vpop.f32.mrb[6].mxu1 }
  0xfe   : > { %v456_v49 = vmax.f32 %v412_v45, 0.0  ;;  %v415_v50 = vadd.f32 %v861_v48, %v795_v29  ;;  %875 = vmatmul.mubr.msk.bf16.vlgmr.msra.gmra.mrb[16].mxu1 %vm328_vm0, %v467_v42  ;;  %v406_v51 = vpop.f32.mrb[7].mxu1 }
  0xff   : > { %v454_v52 = vmax.f32 %v404_v47, 0.0  ;;  %v407_v53 = vadd.f32 %v795_v29, %v406_v51 }
 0x100   : > { %v457_v54 = vmax.f32 %v415_v50, 0.0 }
 0x101   : > { %v455_v55 = vmax.f32 %v407_v53, 0.0 }
 0x102   : > { %v469_v56 = vpack.c.bf16 %v457_v54, %v456_v49 }
 0x103   : > { %v468_v57 = vpack.c.bf16 %v455_v55, %v454_v52  ;;  %v864_v58 = vpop.f32.mrb[8].mxu1 }
 0x104   : > { %v428_v59 = vadd.f32 %v864_v58, %v795_v29  ;;  %v419_v60 = vpop.f32.mrb[9].mxu1 }
 0x105   : > { %878 = vmatprep.mubr.msk.bf16.mxu1 %vm328_vm0, %v468_v57  ;;  %v420_v61 = vadd.f32 %v795_v29, %v419_v60  ;;  %v865_v62 = vpop.f32.mrb[10].mxu1 }
 0x106   : > { %879 = vmatmul.mubr.msk.bf16.gmra.mrb[20].mxu1 %vm328_vm0, %v469_v56  ;;  %v460_v63 = vmax.f32 %v428_v59, 0.0  ;;  %v431_v0 = vadd.f32 %v865_v62, %v795_v29  ;;  %v422_v1 = vpop.f32.mrb[11].mxu1 }
 0x107   : > { %v458_v2 = vmax.f32 %v420_v61, 0.0  ;;  %v423_v3 = vadd.f32 %v795_v29, %v422_v1 }
 0x108   : > { %v461_v4 = vmax.f32 %v431_v0, 0.0 }
 0x109   : > { %v459_v5 = vmax.f32 %v423_v3, 0.0 }
 0x10a   : > { %v471_v6 = vpack.c.bf16 %v461_v4, %v460_v63 }
 0x10b   : > { %v470_v7 = vpack.c.bf16 %v459_v5, %v458_v2  ;;  %v868_v8 = vpop.f32.mrb[12].mxu1 }
 0x10c   : > { %v444_v9 = vadd.f32 %v868_v8, %v795_v29  ;;  %v435_v10 = vpop.f32.mrb[13].mxu1 }
 0x10d   : > { %882 = vmatprep.mubr.msk.bf16.mxu1 %vm328_vm0, %v470_v7  ;;  %v436_v11 = vadd.f32 %v795_v29, %v435_v10  ;;  %v869_v12 = vpop.f32.mrb[14].mxu1 }
 0x10e   : > { %883 = vmatmul.mubr.msk.bf16.gmra.mrb[24].mxu1 %vm328_vm0, %v471_v6  ;;  %v464_v13 = vmax.f32 %v444_v9, 0.0  ;;  %v447_v14 = vadd.f32 %v869_v12, %v795_v29  ;;  %v438_v15 = vpop.f32.mrb[15].mxu1 }
 0x10f   : > { %v462_v16 = vmax.f32 %v436_v11, 0.0  ;;  %v439_v17 = vadd.f32 %v795_v29, %v438_v15 }
 0x110   : > { %v465_v18 = vmax.f32 %v447_v14, 0.0 }
 0x111   : > { %v463_v19 = vmax.f32 %v439_v17, 0.0 }
 0x112   : > { %v473_v20 = vpack.c.bf16 %v465_v18, %v464_v13 }
 0x113   : > { %v472_v21 = vpack.c.bf16 %v463_v19, %v462_v16 }
 0x115   : > { %886 = vmatprep.mubr.msk.bf16.mxu1 %vm328_vm0, %v472_v21 }
 0x116   : > { %887 = vmatmul.mubr.msk.bf16.gmra.mrb[28].mxu1 %vm328_vm0, %v473_v20 }
 0x1d1   : > { %v876_v26 = vpop.f32.mrb[16].mxu1 }
 0x1d2   : > { %v564_v27 = vadd.f32 %v876_v26, %v806_v25  ;;  %v555_v28 = vpop.f32.mrb[17].mxu1 }
 0x1d3   : > { %v556_v29 = vadd.f32 %v806_v25, %v555_v28  ;;  %v877_v30 = vpop.f32.mrb[18].mxu1  ;;  %v649_v28 = vlaneseq }
 0x1d4   : > { %v567_v31 = vadd.f32 %v877_v30, %v806_v25  ;;  %v558_v32 = vpop.f32.mrb[19].mxu1  ;;  %v620_v34 = vmax.f32 %v564_v27, 0.0  ;;  %v634_v27 = vld [vmem:[%s1245_s5] sm:$0x1] }
 0x1d5   : > { %v559_v33 = vadd.f32 %v806_v25, %v558_v32  ;;  %v618_v36 = vmax.f32 %v556_v29, 0.0  ;;  %v650_v29 = vshrl.u32 %v649_v28, 7 }
 0x1d6   : > { %v621_v35 = vmax.f32 %v567_v31, 0.0  ;;  %v647_v31 = vpop.permute.xlu0 %646 }
 0x1d7   : > { %v619_v37 = vmax.f32 %v559_v33, 0.0  ;;  %v651_v30 = vsub.s32 0, %v650_v29 }
 0x1d8   : > { %v636_v38 = vpack.c.bf16 %v621_v35, %v620_v34 }
 0x1d9   : > { %v880_v39 = vpop.f32.mrb[20].mxu1  ;;  %v635_v40 = vpack.c.bf16 %v619_v37, %v618_v36  ;;  %v652_v32 = vrot.slane %v647_v31, %v651_v30 }
 0x1da   : > { %v580_v41 = vadd.f32 %v880_v39, %v806_v25  ;;  %v571_v42 = vpop.f32.mrb[21].mxu1  ;;  %v660_v58 = vsel %vm328_vm0, %v636_v38, 0 }
 0x1db   : > { %v572_v43 = vadd.f32 %v806_v25, %v571_v42  ;;  %v881_v44 = vpop.f32.mrb[22].mxu1  ;;  %v657_v45 = vsel %vm328_vm0, %v635_v40, 0 }
 0x1dc   : > { %v624_v46 = vmax.f32 %v580_v41, 0.0  ;;  %v583_v47 = vadd.f32 %v881_v44, %v806_v25  ;;  %891 = vmatpush3.bf16.xpose.msra.mxu0 %v657_v45  ;;  %v574_v48 = vpop.f32.mrb[23].mxu1 }
 0x1dd   : > { %v622_v49 = vmax.f32 %v572_v43, 0.0  ;;  %v575_v50 = vadd.f32 %v806_v25, %v574_v48  ;;  %892 = vmatprep.subr.bf16.mxu0 %v1021_v22 }
 0x1de   : > { %v625_v51 = vmax.f32 %v583_v47, 0.0 }
 0x1df   : > { %v623_v52 = vmax.f32 %v575_v50, 0.0 }
 0x1e0   : > { %v638_v53 = vpack.c.bf16 %v625_v51, %v624_v46 }
 0x1e1   : > { %v637_v54 = vpack.c.bf16 %v623_v52, %v622_v49  ;;  %v884_v55 = vpop.f32.mrb[24].mxu1 }
 0x1e2   : > { %v596_v56 = vadd.f32 %v884_v55, %v806_v25  ;;  %v587_v57 = vpop.f32.mrb[25].mxu1  ;;  %v666_v21 = vsel %vm328_vm0, %v638_v53, 0 }
 0x1e3   : > { %v588_v59 = vadd.f32 %v806_v25, %v587_v57  ;;  %v885_v60 = vpop.f32.mrb[26].mxu1  ;;  %v663_v9 = vsel %vm328_vm0, %v637_v54, 0 }
 0x1e4   : > { %893 = vmatpush3.bf16.xpose.msra.mxu0 %v660_v58  ;;  %v628_v61 = vmax.f32 %v596_v56, 0.0  ;;  %v599_v62 = vadd.f32 %v885_v60, %v806_v25  ;;  %v590_v63 = vpop.f32.mrb[27].mxu1 }
 0x1e5   : > { %v626_v0 = vmax.f32 %v588_v59, 0.0  ;;  %894 = vmatprep.subr.bf16.mxu0 %v1021_v22  ;;  %v591_v1 = vadd.f32 %v806_v25, %v590_v63 }
 0x1e6   : > { %v629_v2 = vmax.f32 %v599_v62, 0.0 }
 0x1e7   : > { %v627_v3 = vmax.f32 %v591_v1, 0.0 }
 0x1e8   : > { %v640_v4 = vpack.c.bf16 %v629_v2, %v628_v61 }
 0x1e9   : > { %v639_v5 = vpack.c.bf16 %v627_v3, %v626_v0  ;;  %v888_v6 = vpop.f32.mrb[28].mxu1 }
 0x1ea   : > { %v612_v7 = vadd.f32 %v888_v6, %v806_v25  ;;  %v603_v8 = vpop.f32.mrb[29].mxu1  ;;  %v672_v24 = vsel %vm328_vm0, %v640_v4, 0 }
 0x1eb   : > { %v604_v10 = vadd.f32 %v806_v25, %v603_v8  ;;  %v889_v11 = vpop.f32.mrb[30].mxu1  ;;  %v669_v23 = vsel %vm328_vm0, %v639_v5, 0 }
 0x1ec   : > { %895 = vmatpush3.bf16.xpose.msra.mxu0 %v663_v9  ;;  %v632_v12 = vmax.f32 %v612_v7, 0.0  ;;  %v615_v13 = vadd.f32 %v889_v11, %v806_v25  ;;  %v606_v14 = vpop.f32.mrb[31].mxu1 }
 0x1ed   : > { %896 = vmatprep.subr.bf16.mxu0 %v1021_v22  ;;  %v630_v15 = vmax.f32 %v604_v10, 0.0  ;;  %v607_v16 = vadd.f32 %v806_v25, %v606_v14 }
 0x1ee   : > { %v633_v17 = vmax.f32 %v615_v13, 0.0 }
 0x1ef   : > { %v631_v18 = vmax.f32 %v607_v16, 0.0 }
 0x1f0   : > { %v642_v19 = vpack.c.bf16 %v633_v17, %v632_v12 }
 0x1f1   : > { %v641_v20 = vpack.c.bf16 %v631_v18, %v630_v15 }
 0x1f2   : > { %v678_v26 = vsel %vm328_vm0, %v642_v19, 0 }
 0x1f3   : > { %v675_v25 = vsel %vm328_vm0, %v641_v20, 0 }
 0x1f4   : > { %897 = vmatpush3.bf16.xpose.msra.mxu0 %v666_v21 }
 0x1f5   : > { %898 = vmatprep.subr.bf16.mxu0 %v1021_v22 }
 0x1fc   : > { %899 = vmatpush3.bf16.xpose.msra.mxu0 %v669_v23 }
 0x1fd   : > { %900 = vmatprep.subr.bf16.mxu0 %v1021_v22 }
 0x204   : > { %901 = vmatpush3.bf16.xpose.msra.mxu0 %v672_v24 }
 0x205   : > { %902 = vmatprep.subr.bf16.mxu0 %v1021_v22 }
 0x20c   : > { %903 = vmatpush3.bf16.xpose.msra.mxu0 %v675_v25 }
 0x20d   : > { %904 = vmatprep.subr.bf16.mxu0 %v1021_v22 }
 0x214   : > { %905 = vmatpush3.bf16.xpose.msra.mxu0 %v678_v26 }
 0x21b   : > { %907 = vmatmul.mubr.msk.bf16.vlgmr.msra.gmra.mrb[0].mxu0 %vm328_vm0, %v634_v27 }
 0x2ee   : > { %v714_v22 = vpop.f32.mrb[0].mxu0 }
 0x2ef   : > { %v715_v33 = vadd.f32 %v714_v22, %v652_v32  ;;  %v908_v34 = vpop.f32.mrb[1].mxu0 }
 0x2f0   : > { %v717_v35 = vpop.f32.mrb[2].mxu0 }
 0x2f1   : > { %720 = vst [vmem:[%s273_s20] sm:$0x1] %v715_v33  ;;  %v909_v36 = vpop.f32.mrb[3].mxu0 }
 0x2f2   : > { %970 = shalt.err (!%p967_p3)
}
 0x2f3   : > { %s971_s16 = scalar_lea.hbm %s1198_s24, 16  ;;  %s975_s17 = scalar_lea.hbm %s1247_s7, 48 }
 0x2f4   : > { %p972_p4 = scmp.ne.s32.totalorder %s1198_s24, %s971_s16  ;;  %p976_p9 = scmp.lt.u32.totalorder %s1198_s24, %s1247_s7 }
 0x2f5   : > { %p977_p10 = scmp.lt.u32.totalorder %s975_s17, %s971_s16  ;;  %p979_p12 = scmp.lt.u32.totalorder %s971_s16, %s1198_s24 }
 0x2f6   : > { %p973_p7 = pnand %p972_p4, %p1103_p5 }
 0x2f7   : > { %p978_p11 = por %p977_p10, %p976_p9 }
 0x2f8   : > { %p974_p8 = pneg %p973_p7 }
 0x2f9   : > { %p980_p13 = por %p979_p12, %p978_p11 }
 0x2fb   : > { %p981_p0 = pnand %p980_p13, %p974_p8 }
 0x2fd   : > { %984 = shalt.err (!%p981_p0)
}
 0x2fe   : > { %910 = dma.vmem_to_hbm [thread:$0]  (%p1103_p5), %s1200_s21, 16, %s1198_s24, %s722_s25  }
 0x2ff PF: > { %p916_p1 = scmp.ge.s32.totalorder %s1019_s29, 2  ;;  %s746_s20 = sand.u32 1, %s1007_s26  }
 0x300   : > { %s747_s22 = scalar_lea.sflag [#allocation4], %s746_s20 }
 0x301   : > { %p913_p2 = pnand %p916_p1, %p1107_p6 }
 0x303   : > { %1002 = dma.done.wait (!%p913_p2), %s747_s22, 16  }
 0x304   : > { %1004 = vsyncadd (!%p913_p2), %s747_s22, 4294967280  ;;  %p19_p3 = scmp.ge.s32.totalorder %s1091_s8, 5   ;;  %s1250_s26 = smov %s1011_s27 }
 0x305   : > { %s1251_s27 = smov %s1015_s28  ;;  %s1252_s28 = smov %s1101_s11 }
 0x306   : > { %s1253_s29 = smov %s1091_s8  ;;  %21 = sbr.rel (!%p19_p3) target bundleno = 6 (0x6), region = 83 }
 0x30d   :  { %751 = vsyncpa [#allocation4], 1 }
 0x30e   :  { %753 = vsyncpa [#allocation4 + $0x1], 1 }

</bundles_post_ra>
